<compile_context>
chip_gen: v7x
topology: tpu7x:2x2x1
jax: 0.10.0
libtpu: 0.0.40
codegen_flags: <defaults>
</compile_context>

<pallas_src>
import jax
import jax.numpy as jnp
from jax.experimental import pallas as pl
from jax.experimental.pallas import tpu as pltpu

_LANES = 128               # vreg lane width: last dim of the lane-dense slab
_SUBLANES = 8              # f32 sublane granularity
_DEFAULT_TILE_ROWS = 4096  # rows per grid step (2 MiB f32 block)


def _round_up(v, m):
    return ((v + m - 1) // m) * m


def _linear11_kernel(w_ref, b_ref, x_ref, o_ref):
    # w_ref, b_ref: (1, 1) f32 scalars in SMEM
    # x_ref, o_ref: (tile_rows, 128) f32 tiles in VMEM
    w = w_ref[0, 0]
    b = b_ref[0, 0]
    o_ref[...] = x_ref[...] * w + b  # VPU multiply-add; co-issues with ld/st


def multiply_network(x, w, b, *, tile_rows=_DEFAULT_TILE_ROWS):
    """y = nn.Linear(1, 1)(x)  ==  x * w[0, 0] + b[0], same shape/dtype as x.

    x: (..., 1) (PyTorch (batch, in_features=1) layout)
    w: (1, 1)   (PyTorch weight shape (out_features, in_features))
    b: (1,)
    """
    orig_shape = x.shape
    orig_dtype = x.dtype
    n = x.size

    # Lane-dense slab: rows of 128 lanes; pad only the <=127-element tail.
    rows = pl.cdiv(n, _LANES)
    pad = rows * _LANES - n

    # Tile selection:
    #   * never exceed the data (rounded up to the sublane granularity),
    #   * keep >= 4 row tiles for mid/large inputs so v7x's two TensorCores
    #     both get work via the "parallel" grid axis,
    #   * multiple of 8 sublanes, >= 8.
    tile_rows = max(
        _SUBLANES,
        min(
            _round_up(int(tile_rows), _SUBLANES),
            _round_up(rows, _SUBLANES),
            max(_SUBLANES, _round_up(pl.cdiv(rows, 4), _SUBLANES)),
        ),
    )

    x_flat = x.reshape(-1).astype(jnp.float32)
    if pad:
        x_flat = jnp.pad(x_flat, (0, pad))
    x2d = x_flat.reshape(rows, _LANES)

    w2 = jnp.asarray(w, jnp.float32).reshape(1, 1)
    b2 = jnp.asarray(b, jnp.float32).reshape(1, 1)

    num_tiles = pl.cdiv(rows, tile_rows)          # partial last block handled by Pallas
    block_bytes = tile_rows * _LANES * 4
    total_elems = rows * _LANES                   # actual elements moved by the kernel

    y2d = pl.pallas_call(
        _linear11_kernel,
        out_shape=jax.ShapeDtypeStruct((rows, _LANES), jnp.float32),
        grid=(num_tiles,),
        in_specs=[
            pl.BlockSpec(memory_space=pltpu.SMEM),                 # w (1,1) scalar
            pl.BlockSpec(memory_space=pltpu.SMEM),                 # b (1,1) scalar
            pl.BlockSpec((tile_rows, _LANES), lambda i: (i, 0)),   # x tile
        ],
        out_specs=pl.BlockSpec((tile_rows, _LANES), lambda i: (i, 0)),
        compiler_params=pltpu.CompilerParams(
            dimension_semantics=("parallel",),
            # in + out, double-buffered, plus headroom for compiler scratch.
            vmem_limit_bytes=min(64 << 20, 4 * block_bytes + (8 << 20)),
        ),
        cost_estimate=pl.CostEstimate(
            flops=2 * total_elems,
            transcendentals=0,
            bytes_accessed=2 * total_elems * 4,
        ),
    )(w2, b2, x2d)

    if pad:
        y = y2d.reshape(-1)[:n].reshape(orig_shape)   # only when a tail was padded
    else:
        y = y2d.reshape(orig_shape)                   # free bitcast, no copy
    return y.astype(orig_dtype)


if __name__ == "__main__":
    key = jax.random.PRNGKey(0)
    kx, kw, kb = jax.random.split(key, 3)

    # Deterministic parameter init (PyTorch default: U(-1, 1) for fan_in=1).
    w = jax.random.uniform(kw, (1, 1), jnp.float32, minval=-1.0, maxval=1.0)
    b = jax.random.uniform(kb, (1,), jnp.float32, minval=-1.0, maxval=1.0)

    # 1) Small input consistent with nn.Linear(1, 1): batch=8, features=1.
    #    Exercises a single partial block (1 row of 128 lanes, 8 valid elems).
    x = jax.random.normal(kx, (8, 1), jnp.float32)
    y = jax.block_until_ready(multiply_network(x, w, b))
    y_ref = x @ w.T + b
    assert y.shape == x.shape and y.dtype == x.dtype
    assert jnp.allclose(y, y_ref, atol=1e-6), "mismatch vs reference (small)"

    # 2) Tail-padding path + multi-tile grid: 3000 elems -> 24 rows of 128
    #    lanes (72-element pad), auto tile of 8 rows -> 3 grid steps.
    x2 = jax.random.normal(kx, (3000, 1), jnp.float32)
    y2 = jax.block_until_ready(multiply_network(x2, w, b))
    y2_ref = x2 @ w.T + b
    assert y2.shape == x2.shape
    assert jnp.allclose(y2, y2_ref, atol=1e-6), "mismatch vs reference (padded)"

    # 3) No-pad path + masked partial last row-block: 2560 elems -> exactly 20
    #    rows (no pad, free output reshape), tile 8 rows -> grid 3 with a
    #    4-row edge block (padded reads / masked writes).
    x3 = jax.random.normal(kx, (2560, 1), jnp.float32)
    y3 = jax.block_until_ready(multiply_network(x3, w, b))
    y3_ref = x3 @ w.T + b
    assert y3.shape == x3.shape
    assert jnp.allclose(y3, y3_ref, atol=1e-6), "mismatch vs reference (edge block)"

    print("KERNEL_OK")
</pallas_src>

<mosaic_0001>
module attributes {stable_mosaic.version = 11 : i64} {
  func.func @_linear11_kernel(%arg0: i32, %arg1: memref<1x1xf32, #tpu.memory_space<smem>>, %arg2: memref<1x1xf32, #tpu.memory_space<smem>>, %arg3: memref<8x128xf32, #tpu.memory_space<vmem>>, %arg4: memref<8x128xf32, #tpu.memory_space<vmem>>) attributes {dimension_semantics = [#tpu.dimension_semantics<parallel>], iteration_bounds = array<i64: 1>, scalar_prefetch = 0 : i64, scratch_operands = 0 : i64, tpu.core_type = #tpu.core_type<tc>, window_params = [{transform_indices = @transform_0, window_bounds = array<i64: 1, 1>}, {transform_indices = @transform_1, window_bounds = array<i64: 1, 1>}, {transform_indices = @transform_2, window_bounds = array<i64: 8, 128>}, {transform_indices = @transform_3, window_bounds = array<i64: 8, 128>}]} {
    %c0 = arith.constant 0 : index
    %c0_0 = arith.constant 0 : index
    %0 = memref.load %arg1[%c0, %c0_0] : memref<1x1xf32, #tpu.memory_space<smem>>
    %c0_1 = arith.constant 0 : index
    %c0_2 = arith.constant 0 : index
    %1 = memref.load %arg2[%c0_1, %c0_2] : memref<1x1xf32, #tpu.memory_space<smem>>
    %c0_3 = arith.constant 0 : index
    %c0_4 = arith.constant 0 : index
    %2 = vector.load %arg3[%c0_3, %c0_4] : memref<8x128xf32, #tpu.memory_space<vmem>>, vector<8x128xf32>
    %3 = vector.broadcast %0 : f32 to vector<8x128xf32>
    %4 = arith.mulf %2, %3 : vector<8x128xf32>
    %5 = vector.broadcast %1 : f32 to vector<8x128xf32>
    %6 = arith.addf %4, %5 : vector<8x128xf32>
    %c0_5 = arith.constant 0 : index
    %c0_6 = arith.constant 0 : index
    %7 = vector.load %arg4[%c0_5, %c0_6] : memref<8x128xf32, #tpu.memory_space<vmem>>, vector<8x128xf32>
    tpu.vector_store %arg4[%c0_5, %c0_6], %6 {strides = array<i32>} : memref<8x128xf32, #tpu.memory_space<vmem>>, vector<8x128xf32>,
    return
  }
  func.func @transform_0(%arg0: i32) -> (i32, i32) {
    %c0_i32 = arith.constant 0 : i32
    %c0_i32_0 = arith.constant 0 : i32
    %c0_i32_1 = arith.constant 0 : i32
    return %c0_i32, %c0_i32_0 : i32, i32
  }
  func.func @transform_1(%arg0: i32) -> (i32, i32) {
    %c0_i32 = arith.constant 0 : i32
    %c0_i32_0 = arith.constant 0 : i32
    %c0_i32_1 = arith.constant 0 : i32
    return %c0_i32, %c0_i32_0 : i32, i32
  }
  func.func @transform_2(%arg0: i32) -> (i32, i32) {
    %c0_i32 = arith.constant 0 : i32
    %c0_i32_0 = arith.constant 0 : i32
    return %arg0, %c0_i32 : i32, i32
  }
  func.func @transform_3(%arg0: i32) -> (i32, i32) {
    %c0_i32 = arith.constant 0 : i32
    %c0_i32_0 = arith.constant 0 : i32
    return %arg0, %c0_i32 : i32, i32
  }
}

</mosaic_0001>

<bundles_post_ra>
// kernel: tpu_custom_call.1
= control target key start
LH: loop header
LB: loop body
LE: loop exit
PB: predicated region body
PF: predicated region fallthrough
CT: control target
= control target key end

     0   :  { %10 = vsyncpa [#allocation5], 0  ;;  %s112_s0 = inlined_call_operand.<no memory space> [shape: f32[1,1], index: 0, kind: input, shape index: {}]   ;;  %s113_s1 = inlined_call_operand.<no memory space> [shape: f32[1,1], index: 1, kind: input, shape index: {}]   ;;  %s114_s2 = inlined_call_operand.vmem [shape: f32[1,128], index: 2, kind: input, shape index: {}]   ;;  %s115_s3 = inlined_call_operand.hbm [shape: f32[1,128], index: 3, kind: output, shape index: {}]  }
   0x1   :  { %v19_v0 = vld [vmem:[%s114_s2] sm:$0xff]  ;;  %v20_v1 = vstv %s112_s0  ;;  %v22_v2 = vstv %s113_s1 }
   0x2   :  { %v21_v3 = vmul.f32 %v20_v1, %v19_v0 }
   0x4   :  { %v23_v4 = vadd.f32 %v22_v2, %v21_v3 }
   0x6   :  { %24 = vst [vmem:[#allocation4] sm:$0xff] %v23_v4 }
   0x7   :  { %29 = vsyncadd [#allocation5], 112  ;;  %s68_s18 = smov [#allocation4]  }
   0x8   :  { %s30_s19 = sshll.u32 %s68_s18, 4  ;;  %s31_s19 = int_to_ptr.vmem [resolvable:$true] %s30_s19 }
   0x9   :  { %s44_s20 = scalar_lea.vmem %s31_s19, 16  ;;  %s48_s21 = scalar_lea.vmem %s31_s19, 128 }
   0xa   :  { %p45_p0 = scmp.ne.s32.totalorder %s31_s19, %s44_s20  ;;  %p49_p1 = scmp.lt.s32.totalorder %s31_s19, %s31_s19 }
   0xb   :  { %p50_p2 = scmp.lt.s32.totalorder %s48_s21, %s44_s20 }
   0xd   :  { %p51_p3 = por %p50_p2, %p49_p1 }
   0xf   :  { %p52_p4 = pnand %p51_p3, %p45_p0 }
  0x11   :  { %55 = shalt.err (!%p52_p4)
}
  0x12   :  { %s56_s22 = scalar_lea.hbm %s115_s3, 16 }
  0x13   :  { %p57_p5 = scmp.ne.s32.totalorder %s115_s3, %s56_s22  ;;  %p60_p6 = scmp.lt.u32.totalorder %s56_s22, %s115_s3 }
  0x15   :  { %p62_p7 = pnand %p60_p6, %p57_p5 }
  0x17   :  { %65 = shalt.err (!%p62_p7)
}
  0x18   :  { %s69_s26 = smov 16   ;;  %s70_s27 = smov 1  }
  0x19   :  { %36 = dma.vmem_to_hbm [thread:$0]  %s31_s19, 16, %s115_s3, [#allocation5], %s69_s26, %s69_s26, %s70_s27  }
  0x1a   :  { %66 = dma.done.wait [#allocation5], 128  }
  0x1b   :  { %67 = vsyncadd [#allocation5], 4294967168 }
  0x1c   :  { %40 = vsyncpa [#allocation5], 1 }

</bundles_post_ra>
